<compile_context>
chip_gen: v7x
topology: tpu7x:2x2x1
jax: 0.10.0
libtpu: 0.0.40
codegen_flags: <defaults>
</compile_context>

<pallas_src>
import functools
import math

import numpy as np
import jax
import jax.numpy as jnp
from jax import lax
from jax.experimental import pallas as pl
from jax.experimental.pallas import tpu as pltpu

# ----------------------------- configuration (Args) -----------------------------
NUM_MODALITY = 2                     # Args.NUM_MODALITY (small synthetic value)
NUM_TARGETS = 2                      # Args.NUM_TARGETS
FEATURES = (64, 64, 128, 256, 512, 64)   # normal_features
LRELU_SLOPE = 0.1                    # LeakyReLU negative_slope (encoder + decoder)
IN_EPS = 1e-5                        # InstanceNorm3d eps
TEMB_CH = 128                        # sinusoidal timestep-embedding width
TEMB_HID = 512                       # temb MLP hidden width
DIFFUSION_STEPS = 1000

# ----------------------------- diffusion schedule --------------------------------
_BETAS = np.linspace(1e-4, 0.02, DIFFUSION_STEPS, dtype=np.float64)
ALPHAS_CUMPROD = jnp.asarray(np.cumprod(1.0 - _BETAS), dtype=jnp.float32)
SQRT_ACP = jnp.sqrt(ALPHAS_CUMPROD)
SQRT_1M_ACP = jnp.sqrt(1.0 - ALPHAS_CUMPROD)


def _round_up(x, m):
    return (x + m - 1) // m * m


def _pick_chunk(S, cap=2048):
    """Largest spatial chunk <= cap that divides S and is a multiple of 8 (or S itself)."""
    if S <= cap:
        return S
    for ts in range(cap, 7, -8):
        if S % ts == 0:
            return ts
    return S


# =============================== Pallas kernels ==================================
# --- kernel 1: tiled matmul  C = A @ W + bias, optional fused epilogue (bf16 in, f32 acc)
def _matmul_kernel(a_ref, b_ref, bias_ref, o_ref, acc_ref, *, act):
    @pl.when(pl.program_id(2) == 0)
    def _():
        acc_ref[...] = jnp.zeros_like(acc_ref)

    acc_ref[...] += jnp.dot(a_ref[...], b_ref[...], preferred_element_type=jnp.float32)

    @pl.when(pl.program_id(2) == pl.num_programs(2) - 1)
    def _():
        out = acc_ref[...] + bias_ref[...]
        if act == "leaky":
            out = jnp.where(out >= 0, out, LRELU_SLOPE * out)
        elif act == "silu":
            out = out * jax.nn.sigmoid(out)
        o_ref[...] = out.astype(o_ref.dtype)


def _tile_of(dim, cap):
    if dim <= cap:
        return dim, dim               # full-extent block, no padding needed
    return cap, _round_up(dim, cap)


def matmul_bias(a, w, bias, act="none", out_dtype=jnp.float32):
    """a:(M,K) any float, w:(K,N) (pre-stored bf16), bias:(N,) f32 -> (M,N) out_dtype."""
    M, K = a.shape
    K2, N = w.shape
    assert K == K2, (K, K2)
    bias2 = jnp.asarray(bias, jnp.float32).reshape(1, N)

    tm, Mp = _tile_of(M, 256)
    tk, Kp = _tile_of(K, 512)
    tn, Np = _tile_of(N, 256)

    a_p = a.astype(jnp.bfloat16)
    if (Mp, Kp) != (M, K):
        a_p = jnp.pad(a_p, ((0, Mp - M), (0, Kp - K)))
    w_p = w.astype(jnp.bfloat16)
    if (Kp, Np) != (K, N):
        w_p = jnp.pad(w_p, ((0, Kp - K), (0, Np - N)))
    b_p = bias2 if Np == N else jnp.pad(bias2, ((0, 0), (0, Np - N)))

    out = pl.pallas_call(
        functools.partial(_matmul_kernel, act=act),
        out_shape=jax.ShapeDtypeStruct((Mp, Np), out_dtype),
        grid=(Mp // tm, Np // tn, Kp // tk),
        in_specs=[
            pl.BlockSpec((tm, tk), lambda i, j, k: (i, k)),
            pl.BlockSpec((tk, tn), lambda i, j, k: (k, j)),
            pl.BlockSpec((1, tn), lambda i, j, k: (0, j)),
        ],
        out_specs=pl.BlockSpec((tm, tn), lambda i, j, k: (i, j)),
        scratch_shapes=[pltpu.VMEM((tm, tn), jnp.float32)],
        compiler_params=pltpu.CompilerParams(
            dimension_semantics=("parallel", "parallel", "arbitrary")),
    )(a_p, w_p, b_p)
    if (Mp, Np) != (M, N):
        out = out[:M, :N]
    return out


# --- kernel 2: fused 3x3x3 conv + bias + InstanceNorm statistics ------------------
def _conv3x3_in_kernel(x0_ref, x1_ref, x2_ref, w_ref, b_ref,
                       o_ref, s1_ref, s2_ref, acc1_ref, acc2_ref, *, H, W):
    # x{kd}_ref: (P, Cin) bf16 flattened padded (H,W) slab of depth plane d+kd
    # w_ref: (27, Cin, tn) bf16 ; b_ref: (1, tn) f32
    # o_ref: (J, tn) f32 raw conv output (J = H*(W+2), includes 2 junk cols per row)
    # s1_ref / s2_ref: (1, tn) f32 per-(b, d_outer) masked sum / sum-of-squares
    Wp = W + 2
    J = H * Wp
    di = pl.program_id(3)

    @pl.when(di == 0)
    def _():
        acc1_ref[...] = jnp.zeros_like(acc1_ref)
        acc2_ref[...] = jnp.zeros_like(acc2_ref)

    slabs = (x0_ref, x1_ref, x2_ref)
    acc = None
    for kd in range(3):
        for kh in range(3):
            for kw in range(3):
                a = slabs[kd][pl.ds(kh * Wp + kw, J), :]       # shifted window, no HBM copy
                wt = w_ref[kd * 9 + kh * 3 + kw]                # (Cin, tn)
                c = jnp.dot(a, wt, preferred_element_type=jnp.float32)
                acc = c if acc is None else acc + c
    out = acc + b_ref[...]
    o_ref[...] = out.astype(o_ref.dtype)

    # mask the 2 junk columns per row before accumulating InstanceNorm stats
    col = lax.broadcasted_iota(jnp.int32, (J, 1), 0) % Wp
    masked = jnp.where(col < W, out, 0.0)
    acc1_ref[...] += jnp.sum(masked, axis=0, keepdims=True)
    acc2_ref[...] += jnp.sum(masked * masked, axis=0, keepdims=True)

    @pl.when(di == pl.num_programs(3) - 1)
    def _():
        s1_ref[...] = acc1_ref[...]
        s2_ref[...] = acc2_ref[...]


def conv3d_3x3(x, w27, bias2):
    """x: (B, D, H, W, Cin) ; w27: (27, Cin, Cout) bf16 ; bias2: (1, Cout) f32.

    Returns (y_raw, s1, s2):
      y_raw: (B, D, J, Cout) f32 raw conv output (J = H*(W+2), junk cols cropped later)
      s1/s2: (B, DO, 1, Cout) partial masked sums over valid positions (reduce over DO outside)
    """
    B, D, H, W, Cin = x.shape
    Cout = w27.shape[-1]
    Wp = W + 2
    P = (H + 3) * Wp              # H padded (1, 2) -> slack rows keep shifted reads in-bounds
    J = H * Wp

    Cin_p = _round_up(Cin, 8)
    xp = jnp.pad(x.astype(jnp.bfloat16),
                 ((0, 0), (1, 1), (1, 2), (1, 1), (0, Cin_p - Cin)))
    xp = xp.reshape(B, D + 2, P, Cin_p)
    if Cin_p != Cin:
        w27 = jnp.pad(w27, ((0, 0), (0, Cin_p - Cin), (0, 0)))

    if Cout <= 256:
        tn = Cout
    elif Cout % 256 == 0:
        tn = 256
    elif Cout % 128 == 0:
        tn = 128
    else:
        tn = Cout
    NT = Cout // tn

    # D_outer keeps a parallel axis for multi-TC chips; D_inner carries the stats reduction.
    DO = 2 if (D % 2 == 0 and D >= 2) else 1
    DI = D // DO

    y, s1, s2 = pl.pallas_call(
        functools.partial(_conv3x3_in_kernel, H=H, W=W),
        out_shape=(jax.ShapeDtypeStruct((B, D, J, Cout), jnp.float32),
                   jax.ShapeDtypeStruct((B, DO, 1, Cout), jnp.float32),
                   jax.ShapeDtypeStruct((B, DO, 1, Cout), jnp.float32)),
        grid=(B, NT, DO, DI),
        in_specs=[
            pl.BlockSpec((None, None, P, Cin_p),
                         lambda b, n, do, di: (b, do * DI + di, 0, 0)),
            pl.BlockSpec((None, None, P, Cin_p),
                         lambda b, n, do, di: (b, do * DI + di + 1, 0, 0)),
            pl.BlockSpec((None, None, P, Cin_p),
                         lambda b, n, do, di: (b, do * DI + di + 2, 0, 0)),
            pl.BlockSpec((27, Cin_p, tn), lambda b, n, do, di: (0, 0, n)),   # resident over D
            pl.BlockSpec((1, tn), lambda b, n, do, di: (0, n)),
        ],
        out_specs=(
            pl.BlockSpec((None, None, J, tn), lambda b, n, do, di: (b, do * DI + di, 0, n)),
            pl.BlockSpec((None, None, 1, tn), lambda b, n, do, di: (b, do, 0, n)),
            pl.BlockSpec((None, None, 1, tn), lambda b, n, do, di: (b, do, 0, n)),
        ),
        scratch_shapes=[pltpu.VMEM((1, tn), jnp.float32),
                        pltpu.VMEM((1, tn), jnp.float32)],
        compiler_params=pltpu.CompilerParams(
            dimension_semantics=("parallel", "parallel", "parallel", "arbitrary"),
            vmem_limit_bytes=64 * 1024 * 1024),
    )(xp, xp, xp, w27, bias2)
    return y, s1, s2


# --- kernel 3: InstanceNorm apply: affine + LeakyReLU + optional temb-add fused ---
def _in_apply_kernel(x_ref, sc_ref, sh_ref, add_ref, o_ref):
    y = x_ref[...] * sc_ref[...] + sh_ref[...]
    y = jnp.where(y >= 0, y, LRELU_SLOPE * y)
    o_ref[...] = (y + add_ref[...]).astype(o_ref.dtype)


def instnorm_lrelu_apply(y_raw, s1, s2, gamma, beta, count, add=None,
                         out_dtype=jnp.bfloat16):
    """y_raw: (B, D, J, C) f32 raw conv output; s1/s2: (B, 1, C) masked sums over `count`."""
    B, D, J, C = y_raw.shape
    Sp = D * J
    x3 = y_raw.reshape(B, Sp, C)

    inv = 1.0 / float(count)
    mean = s1 * inv                                              # (B, 1, C)
    var = jnp.maximum(s2 * inv - mean * mean, 0.0)
    rstd = lax.rsqrt(var + IN_EPS)
    scale = rstd * gamma.reshape(1, 1, C)                        # (B, 1, C)
    shift = beta.reshape(1, 1, C) - mean * scale                 # (B, 1, C)
    addr = (jnp.zeros((B, 1, C), jnp.float32) if add is None
            else add.reshape(B, 1, C).astype(jnp.float32))

    ts = _pick_chunk(Sp)
    nC = Sp // ts
    out = pl.pallas_call(
        _in_apply_kernel,
        out_shape=jax.ShapeDtypeStruct((B, Sp, C), out_dtype),
        grid=(B, nC),
        in_specs=[
            pl.BlockSpec((None, ts, C), lambda b, s: (b, s, 0)),
            pl.BlockSpec((None, 1, C), lambda b, s: (b, 0, 0)),
            pl.BlockSpec((None, 1, C), lambda b, s: (b, 0, 0)),
            pl.BlockSpec((None, 1, C), lambda b, s: (b, 0, 0)),
        ],
        out_specs=pl.BlockSpec((None, ts, C), lambda b, s: (b, s, 0)),
        compiler_params=pltpu.CompilerParams(
            dimension_semantics=("parallel", "parallel")),
    )(x3, scale, shift, addr)
    return out.reshape(B, D, J, C)


def conv_in_lrelu(x, w27, bias2, gamma, beta, add=None):
    """Conv3x3 -> InstanceNorm3d -> LeakyReLU (-> +temb), all on Pallas kernels."""
    B, D, H, W, _ = x.shape
    y_raw, s1, s2 = conv3d_3x3(x, w27, bias2)
    s1 = s1.sum(axis=1)                      # (B, 1, Cout)
    s2 = s2.sum(axis=1)
    out = instnorm_lrelu_apply(y_raw, s1, s2, gamma, beta, D * H * W, add=add)
    Cout = out.shape[-1]
    # drop the two junk columns per row introduced by the padded-width flattening (bf16 copy)
    return out.reshape(B, D, H, W + 2, Cout)[:, :, :, :W, :]


# --- kernel 4: diffusion q_sample  x_t = sqrt(acp_t)*x0 + sqrt(1-acp_t)*noise -----
def _qsample_kernel(x_ref, n_ref, a_ref, b_ref, o_ref):
    o_ref[...] = a_ref[...] * x_ref[...] + b_ref[...] * n_ref[...]


def qsample_pallas(x_flat, noise_flat, coef_a, coef_b):
    B, F = x_flat.shape
    if F <= 2048:
        tf, Fp = F, F
    else:
        tf = 2048
        Fp = _round_up(F, tf)
    xp = x_flat if Fp == F else jnp.pad(x_flat, ((0, 0), (0, Fp - F)))
    npad = noise_flat if Fp == F else jnp.pad(noise_flat, ((0, 0), (0, Fp - F)))
    out = pl.pallas_call(
        _qsample_kernel,
        out_shape=jax.ShapeDtypeStruct((B, Fp), jnp.float32),
        grid=(Fp // tf,),
        in_specs=[
            pl.BlockSpec((B, tf), lambda i: (0, i)),
            pl.BlockSpec((B, tf), lambda i: (0, i)),
            pl.BlockSpec((B, 1), lambda i: (0, 0)),
            pl.BlockSpec((B, 1), lambda i: (0, 0)),
        ],
        out_specs=pl.BlockSpec((B, tf), lambda i: (0, i)),
        compiler_params=pltpu.CompilerParams(dimension_semantics=("parallel",)),
    )(xp, npad, coef_a, coef_b)
    return out[:, :F] if Fp != F else out


# =========================== conv / pooling glue (channels-last) ==================
def conv3d_1x1(x, w, b):
    B, D, H, W, Cin = x.shape
    N = w.shape[1]
    out = matmul_bias(x.reshape(-1, Cin), w, b)
    return out.reshape(B, D, H, W, N)


def deconv3d_2x2(x, w2d, b8):
    # ConvTranspose3d(kernel=2, stride=2); w2d: (Cin, 8*Cout) in (kd,kh,kw)-major order.
    # TODO(synk): the 2x2x2 sub-block scatter is still an XLA transpose; could be folded into
    # the out_spec index_map of a dedicated kernel.
    B, D, H, W, Cin = x.shape
    Cout = w2d.shape[1] // 8
    out = matmul_bias(x.reshape(B * D * H * W, Cin), w2d, b8, out_dtype=jnp.bfloat16)
    out = out.reshape(B, D, H, W, 2, 2, 2, Cout)
    out = out.transpose(0, 1, 4, 2, 5, 3, 6, 7).reshape(B, 2 * D, 2 * H, 2 * W, Cout)
    return out


def maxpool2(x):
    B, D, H, W, C = x.shape
    return x.reshape(B, D // 2, 2, H // 2, 2, W // 2, 2, C).max(axis=(2, 4, 6))


def timestep_embedding(t, dim=TEMB_CH):
    half = dim // 2
    emb = math.log(10000.0) / (half - 1)
    freqs = jnp.exp(jnp.arange(half, dtype=jnp.float32) * -emb)
    args = t.astype(jnp.float32)[:, None] * freqs[None, :]
    return jnp.concatenate([jnp.sin(args), jnp.cos(args)], axis=1)


# ================================ parameters =====================================
class _KeyGen:
    def __init__(self, key):
        self._key = key

    def __call__(self):
        self._key, sub = jax.random.split(self._key)
        return sub


def _winit(key, shape, fan_in, dtype=jnp.float32):
    w = jax.random.normal(key, shape, jnp.float32) / np.sqrt(float(fan_in))
    return w.astype(dtype)


def init_two_conv(kg, cin, cout, with_temb=False):
    p = {
        "w0": _winit(kg(), (27, cin, cout), cin * 27, jnp.bfloat16),
        "b0": jnp.zeros((1, cout), jnp.float32),
        "g0": jnp.ones((cout,), jnp.float32),
        "e0": jnp.zeros((cout,), jnp.float32),
        "w1": _winit(kg(), (27, cout, cout), cout * 27, jnp.bfloat16),
        "b1": jnp.zeros((1, cout), jnp.float32),
        "g1": jnp.ones((cout,), jnp.float32),
        "e1": jnp.zeros((cout,), jnp.float32),
    }
    if with_temb:
        p["tw"] = _winit(kg(), (TEMB_HID, cout), TEMB_HID, jnp.bfloat16)
        p["tb"] = jnp.zeros((cout,), jnp.float32)
    return p


def init_upcat(kg, in_ch, cat_ch, out_ch, halves=True):
    up_ch = in_ch // 2 if halves else in_ch
    return {
        "dw": _winit(kg(), (in_ch, 8 * up_ch), in_ch * 8, jnp.bfloat16),
        "db": jnp.zeros((8 * up_ch,), jnp.float32),
        "convs": init_two_conv(kg, cat_ch + up_ch, out_ch, with_temb=True),
    }


def init_params(key):
    kg = _KeyGen(key)
    fea = FEATURES
    embed = {
        "conv0": init_two_conv(kg, NUM_MODALITY, fea[0]),
        "down1": init_two_conv(kg, fea[0], fea[1]),
        "down2": init_two_conv(kg, fea[1], fea[2]),
        "down3": init_two_conv(kg, fea[2], fea[3]),
        "down4": init_two_conv(kg, fea[3], fea[4]),
    }
    model = {
        "temb_w0": _winit(kg(), (TEMB_CH, TEMB_HID), TEMB_CH, jnp.bfloat16),
        "temb_b0": jnp.zeros((TEMB_HID,), jnp.float32),
        "temb_w1": _winit(kg(), (TEMB_HID, TEMB_HID), TEMB_HID, jnp.bfloat16),
        "temb_b1": jnp.zeros((TEMB_HID,), jnp.float32),
        "conv0": init_two_conv(kg, NUM_MODALITY + NUM_TARGETS, fea[0], True),
        "down1": init_two_conv(kg, fea[0], fea[1], True),
        "down2": init_two_conv(kg, fea[1], fea[2], True),
        "down3": init_two_conv(kg, fea[2], fea[3], True),
        "down4": init_two_conv(kg, fea[3], fea[4], True),
        "up4": init_upcat(kg, fea[4], fea[3], fea[3], True),
        "up3": init_upcat(kg, fea[3], fea[2], fea[2], True),
        "up2": init_upcat(kg, fea[2], fea[1], fea[1], True),
        "up1": init_upcat(kg, fea[1], fea[0], fea[5], False),
        "final_w": _winit(kg(), (fea[5], NUM_TARGETS), fea[5], jnp.bfloat16),
        "final_b": jnp.zeros((NUM_TARGETS,), jnp.float32),
    }
    return {"embed": embed, "model": model}


# ================================ model forward ===================================
def two_conv_fwd(p, x, temb=None):
    proj = None
    if temb is not None:
        # TODO(synk): Diff-UNet's TwoConv injects nonlinearity(temb) via a Linear after conv_0;
        # exact upstream source not provided, reproduced from the published architecture.
        proj = matmul_bias(jax.nn.silu(temb), p["tw"], p["tb"])
    h = conv_in_lrelu(x, p["w0"], p["b0"], p["g0"], p["e0"], add=proj)
    h = conv_in_lrelu(h, p["w1"], p["b1"], p["g1"], p["e1"])
    return h


def down_fwd(p, x, temb=None):
    return two_conv_fwd(p, maxpool2(x), temb)


def upcat_fwd(p, x, skip, temb):
    up = deconv3d_2x2(x, p["dw"], p["db"])
    h = jnp.concatenate([skip, up], axis=-1)
    return two_conv_fwd(p["convs"], h, temb)


def encoder_fwd(p, image):            # BasicUNetEncoder (channels-last)
    x0 = two_conv_fwd(p["conv0"], image)
    x1 = down_fwd(p["down1"], x0)
    x2 = down_fwd(p["down2"], x1)
    x3 = down_fwd(p["down3"], x2)
    x4 = down_fwd(p["down4"], x3)
    return [x0, x1, x2, x3, x4]


def decoder_fwd(p, x, t, image, embeddings):   # BasicUNetDe (channels-last)
    temb = timestep_embedding(t, TEMB_CH)
    temb = matmul_bias(temb, p["temb_w0"], p["temb_b0"], act="silu")
    temb = matmul_bias(temb, p["temb_w1"], p["temb_b1"])
    h = jnp.concatenate([image, x], axis=-1)
    x0 = two_conv_fwd(p["conv0"], h, temb) + embeddings[0]
    x1 = down_fwd(p["down1"], x0, temb) + embeddings[1]
    x2 = down_fwd(p["down2"], x1, temb) + embeddings[2]
    x3 = down_fwd(p["down3"], x2, temb) + embeddings[3]
    x4 = down_fwd(p["down4"], x3, temb) + embeddings[4]
    u4 = upcat_fwd(p["up4"], x4, x3, temb)
    u3 = upcat_fwd(p["up3"], u4, x2, temb)
    u2 = upcat_fwd(p["up2"], u3, x1, temb)
    u1 = upcat_fwd(p["up1"], u2, x0, temb)
    return conv3d_1x1(u1, p["final_w"], p["final_b"])


def _spaced_timesteps(num_timesteps, count):   # space_timesteps(1000, [count]) single section
    frac_stride = 1.0 if count <= 1 else (num_timesteps - 1) / (count - 1)
    cur, taken = 0.0, []
    for _ in range(count):
        taken.append(round(cur))
        cur += frac_stride
    return taken


def _to_cl(x):     # NCDHW -> NDHWC
    return jnp.transpose(x, (0, 2, 3, 4, 1))


def _to_ncdhw(x):  # NDHWC -> NCDHW
    return jnp.transpose(x, (0, 4, 1, 2, 3))


def diff_unet_forward(params, image=None, x=None, pred_type=None, step=None, rng=None):
    if pred_type == "q_sample":
        B = x.shape[0]
        k_noise, k_t = jax.random.split(rng)
        noise = jax.random.normal(k_noise, x.shape, jnp.float32)     # torch.randn_like
        t = jax.random.randint(k_t, (B,), 0, DIFFUSION_STEPS)        # UniformSampler.sample
        coef_a = SQRT_ACP[t].reshape(B, 1)
        coef_b = SQRT_1M_ACP[t].reshape(B, 1)
        x_t = qsample_pallas(x.reshape(B, -1), noise.reshape(B, -1),
                             coef_a, coef_b).reshape(x.shape)
        return x_t, t, noise
    elif pred_type == "denoise":
        img_cl = _to_cl(image)
        x_cl = _to_cl(x)
        embeddings = encoder_fwd(params["embed"], img_cl)
        out = decoder_fwd(params["model"], x_cl, step, img_cl, embeddings)
        return _to_ncdhw(out)
    elif pred_type == "ddim_sample":
        # DDIM(eta=0), ModelMeanType.START_X, clip_denoised=True over space_timesteps(1000,[50]).
        # TODO(synk): original sampling shape is (1, NUM_TARGETS, 78, 120, 120); scaled to the
        # small demo shape here and not executed in the smoke test to bound runtime.
        taken = _spaced_timesteps(DIFFUSION_STEPS, 50)
        acp = np.asarray(ALPHAS_CUMPROD)[taken]
        img_cl = _to_cl(image)
        embeddings = encoder_fwd(params["embed"], img_cl)
        shape = (image.shape[0],) + image.shape[2:] + (NUM_TARGETS,)
        xt = jax.random.normal(rng, shape, jnp.float32)
        for i in reversed(range(len(taken))):
            t_b = jnp.full((shape[0],), taken[i], jnp.int32)
            x0 = jnp.clip(decoder_fwd(params["model"], xt, t_b, img_cl, embeddings), -1.0, 1.0)
            a_t = float(acp[i])
            a_prev = float(acp[i - 1]) if i > 0 else 1.0
            eps = (np.sqrt(1.0 / a_t) * xt - x0) / np.sqrt(1.0 / a_t - 1.0)
            xt = np.sqrt(a_prev) * x0 + np.sqrt(1.0 - a_prev) * eps
        return _to_ncdhw(xt)
    else:
        raise ValueError(f"unknown pred_type: {pred_type}")


# ==================================== main ========================================
if __name__ == "__main__":
    key = jax.random.PRNGKey(0)
    k_param, k_img, k_x, k_q = jax.random.split(key, 4)
    params = init_params(k_param)

    D = H = W = 16   # small spatial size (divisible by 2^4 for the 4 down-samplings)

    # ---- pred_type='q_sample' ----
    x_start = jax.random.normal(k_x, (2, NUM_TARGETS, D, H, W), jnp.float32)
    q_fn = jax.jit(lambda xs, rng: diff_unet_forward(None, x=xs, pred_type="q_sample", rng=rng))
    x_t, t, noise = q_fn(x_start, k_q)

    # ---- pred_type='denoise' ----
    image = jax.random.normal(k_img, (1, NUM_MODALITY, D, H, W), jnp.float32)
    x_noisy = x_t[:1]
    step = jnp.full((1,), 500, jnp.int32)
    denoise_fn = jax.jit(
        lambda p, img, xx, st: diff_unet_forward(p, image=img, x=xx, pred_type="denoise", step=st))
    logits = denoise_fn(params, image, x_noisy, step)

    jax.block_until_ready((x_t, t, noise, logits))
    assert x_t.shape == x_start.shape
    assert t.shape == (2,)
    assert logits.shape == (1, NUM_TARGETS, D, H, W)
    assert bool(jnp.all(jnp.isfinite(logits)))
    print("KERNEL_OK")
</pallas_src>

<mosaic_0001>
module attributes {stable_mosaic.version = 11 : i64} {
  func.func @_qsample_kernel(%arg0: i32, %arg1: memref<2x2048xf32, #tpu.memory_space<vmem>>, %arg2: memref<2x2048xf32, #tpu.memory_space<vmem>>, %arg3: memref<2x1xf32, #tpu.memory_space<vmem>>, %arg4: memref<2x1xf32, #tpu.memory_space<vmem>>, %arg5: memref<2x2048xf32, #tpu.memory_space<vmem>>) attributes {dimension_semantics = [#tpu.dimension_semantics<parallel>], iteration_bounds = array<i64: 4>, scalar_prefetch = 0 : i64, scratch_operands = 0 : i64, tpu.core_type = #tpu.core_type<tc>, window_params = [{transform_indices = @transform_0, window_bounds = array<i64: 2, 2048>}, {transform_indices = @transform_1, window_bounds = array<i64: 2, 2048>}, {pipeline_mode = #tpu.pipeline_mode<synchronous>, transform_indices = @transform_2, window_bounds = array<i64: 2, 1>}, {pipeline_mode = #tpu.pipeline_mode<synchronous>, transform_indices = @transform_3, window_bounds = array<i64: 2, 1>}, {transform_indices = @transform_4, window_bounds = array<i64: 2, 2048>}]} {
    %c0 = arith.constant 0 : index
    %c0_0 = arith.constant 0 : index
    %0 = vector.load %arg3[%c0, %c0_0] : memref<2x1xf32, #tpu.memory_space<vmem>>, vector<2x1xf32>
    %c0_1 = arith.constant 0 : index
    %c0_2 = arith.constant 0 : index
    %1 = vector.load %arg1[%c0_1, %c0_2] : memref<2x2048xf32, #tpu.memory_space<vmem>>, vector<2x2048xf32>
    %2 = vector.broadcast %0 : vector<2x1xf32> to vector<2x2048xf32>
    %3 = arith.mulf %2, %1 : vector<2x2048xf32>
    %c0_3 = arith.constant 0 : index
    %c0_4 = arith.constant 0 : index
    %4 = vector.load %arg4[%c0_3, %c0_4] : memref<2x1xf32, #tpu.memory_space<vmem>>, vector<2x1xf32>
    %c0_5 = arith.constant 0 : index
    %c0_6 = arith.constant 0 : index
    %5 = vector.load %arg2[%c0_5, %c0_6] : memref<2x2048xf32, #tpu.memory_space<vmem>>, vector<2x2048xf32>
    %6 = vector.broadcast %4 : vector<2x1xf32> to vector<2x2048xf32>
    %7 = arith.mulf %6, %5 : vector<2x2048xf32>
    %8 = arith.addf %3, %7 : vector<2x2048xf32>
    %c0_7 = arith.constant 0 : index
    %c0_8 = arith.constant 0 : index
    %9 = vector.load %arg5[%c0_7, %c0_8] : memref<2x2048xf32, #tpu.memory_space<vmem>>, vector<2x2048xf32>
    tpu.vector_store %arg5[%c0_7, %c0_8], %8 {strides = array<i32>} : memref<2x2048xf32, #tpu.memory_space<vmem>>, vector<2x2048xf32>,
    return
  }
  func.func @transform_0(%arg0: i32) -> (i32, i32) {
    %c0_i32 = arith.constant 0 : i32
    %c0_i32_0 = arith.constant 0 : i32
    return %c0_i32, %arg0 : i32, i32
  }
  func.func @transform_1(%arg0: i32) -> (i32, i32) {
    %c0_i32 = arith.constant 0 : i32
    %c0_i32_0 = arith.constant 0 : i32
    return %c0_i32, %arg0 : i32, i32
  }
  func.func @transform_2(%arg0: i32) -> (i32, i32) {
    %c0_i32 = arith.constant 0 : i32
    %c0_i32_0 = arith.constant 0 : i32
    %c0_i32_1 = arith.constant 0 : i32
    return %c0_i32, %c0_i32_0 : i32, i32
  }
  func.func @transform_3(%arg0: i32) -> (i32, i32) {
    %c0_i32 = arith.constant 0 : i32
    %c0_i32_0 = arith.constant 0 : i32
    %c0_i32_1 = arith.constant 0 : i32
    return %c0_i32, %c0_i32_0 : i32, i32
  }
  func.func @transform_4(%arg0: i32) -> (i32, i32) {
    %c0_i32 = arith.constant 0 : i32
    %c0_i32_0 = arith.constant 0 : i32
    return %c0_i32, %arg0 : i32, i32
  }
}

</mosaic_0001>

<bundles_post_ra>
// kernel: _lambda_.1
= control target key start
LH: loop header
LB: loop body
LE: loop exit
PB: predicated region body
PF: predicated region fallthrough
CT: control target
= control target key end

     0   :  { %s694_s15 = smov 0   ;;  %s751_s0 = inlined_call_operand.vmem [shape: f32[2,8192], index: 0, kind: input, shape index: {}]   ;;  %s752_s1 = inlined_call_operand.vmem [shape: f32[2,8192], index: 1, kind: input, shape index: {}]   ;;  %s753_s2 = inlined_call_operand.vmem [shape: f32[2,1], index: 2, kind: input, shape index: {}]   ;;  %s754_s3 = inlined_call_operand.vmem [shape: f32[2,1], index: 3, kind: input, shape index: {}]   ;;  %s755_s4 = inlined_call_operand.vmem [shape: f32[2,8192], index: 4, kind: output, shape index: {}]  }
   0x1 LB: > { %s627_s16 = sadd.s32 4294967295, %s665_s15   ;;  %p631_p0 = scmp.ge.s32.totalorder %s665_s15, 1  ;;  %s665_s15 = sphi %s694_s15, %s14_s15  }
   0x2   : > { %p174_p1 = scmp.lt.s32.totalorder %s665_s15, 5 }
   0x4   : > { %p175_p2 = pnand %p631_p0, %p174_p1 }
   0x5   : > { %v223_v0 = vld [vmem:[%s753_s2] sm:$0x3] (!%p175_p2)  ;;  %v667_v1 = vmov (!%p175_p2), 0   ;;  %s632_s21 = sshll.u32 (!%p175_p2), %s627_s16, 4  ;;  %v668_v3 = vmov (!%p175_p2), 1983009808   ;;  %v241_v5 = vlaneseq (!%p175_p2) }
   0x6   : > { %178 = sbr.rel (%p175_p2) target bundleno = 155 (0x9b), region = 36  ;;  %650 = vset.pattern.permute.xlu0 (!%p175_p2), %v667_v1  ;;  %v337_v2 = vld [vmem:[%s754_s3] sm:$0x3] (!%p175_p2)  ;;  %p206_p3 = scmp.lt.s32.totalorder (!%p175_p2), %s632_s21, 63  ;;  %v239_v4 = vunpack.c.l.s4 (!%p175_p2), %v668_v3 }
   0x7   : > { %230 = vperm.xlu0 (!%p175_p2), %650, %v223_v0   ;;  %v242_v7 = vshrl.u32 (!%p175_p2), %v241_v5, 7 }
   0x8   : > { %v240_v6 = vunpack.c.0.s8 (!%p175_p2), %v239_v4 }
   0xa   : > { %v718_v13 = vsub.s32 (!%p175_p2), %v240_v6, %v242_v7 }
   0xb   : > { %344 = vperm.xlu0 (!%p175_p2), %650, %v337_v2  }
   0xd   : > { %s757_s21 = smov (!%p206_p3, %s632_s21), 63 }
   0xe   : > { %s708_s22 = sshll.u32 %s757_s21, 1 }
   0xf   : > { %s209_s25 = scalar_lea.vmem %s751_s0, %s708_s22  ;;  %s215_s28 = scalar_lea.vmem %s752_s1, %s708_s22 }
  0x10   : > { %v224_v8 = vld [vmem:[%s209_s25] sm:$0xff]  ;;  %v225_v9 = vld [vmem:[%s209_s25 + $0x8] sm:$0xff]  ;;  %v226_v10 = vld [vmem:[%s209_s25 + $0x10] sm:$0xff]  ;;  %s221_s5 = scalar_lea.vmem %s755_s4, %s708_s22 }
  0x11   : > { %v227_v11 = vld [vmem:[%s209_s25 + $0x18] sm:$0xff]  ;;  %v338_v12 = vld [vmem:[%s215_s28] sm:$0xff]  ;;  %v237_v14 = vcombine.high %v224_v8, %v224_v8  ;;  %v339_v15 = vld [vmem:[%s215_s28 + $0x8] sm:$0xff]  ;;  %v254_v18 = vcombine.high %v225_v9, %v225_v9  ;;  %v271_v19 = vcombine.high %v226_v10, %v226_v10  ;;  %v244_v25 = vrot.slane %v224_v8, %v718_v13 }
  0x12   : > { %v340_v16 = vld [vmem:[%s215_s28 + $0x10] sm:$0xff]  ;;  %v341_v17 = vld [vmem:[%s215_s28 + $0x18] sm:$0xff]  ;;  %v288_v20 = vcombine.high %v227_v11, %v227_v11  ;;  %v351_v21 = vcombine.high %v338_v12, %v338_v12  ;;  %v368_v22 = vcombine.high %v339_v15, %v339_v15  ;;  %v261_v27 = vrot.slane %v225_v9, %v718_v13 }
  0x13   : > { %v385_v23 = vcombine.high %v340_v16, %v340_v16  ;;  %v402_v24 = vcombine.high %v341_v17, %v341_v17  ;;  %v251_v26 = vrot.slane %v237_v14, %v718_v13  ;;  %v278_v28 = vrot.slane %v226_v10, %v718_v13 }
  0x14   : > { %v268_v29 = vrot.slane %v254_v18, %v718_v13  ;;  %v285_v30 = vrot.slane %v271_v19, %v718_v13  ;;  %v295_v31 = vrot.slane %v227_v11, %v718_v13  ;;  %v302_v32 = vrot.slane %v288_v20, %v718_v13 }
  0x15   : > { %v358_v33 = vrot.slane %v338_v12, %v718_v13  ;;  %v365_v34 = vrot.slane %v351_v21, %v718_v13  ;;  %v375_v35 = vrot.slane %v339_v15, %v718_v13  ;;  %v392_v36 = vrot.slane %v340_v16, %v718_v13 }
  0x16   : > { %v382_v37 = vrot.slane %v368_v22, %v718_v13  ;;  %v399_v38 = vrot.slane %v385_v23, %v718_v13  ;;  %v409_v39 = vrot.slane %v341_v17, %v718_v13  ;;  %v416_v40 = vrot.slane %v402_v24, %v718_v13 }
  0x17   : > { %v252_v41 = vcombine.high %v244_v25, %v244_v25  ;;  %v253_v42 = vcombine.high %v251_v26, %v251_v26  ;;  %v269_v43 = vcombine.high %v261_v27, %v261_v27  ;;  %v286_v44 = vcombine.high %v278_v28, %v278_v28 }
  0x18   : > { %v270_v45 = vcombine.high %v268_v29, %v268_v29  ;;  %v287_v46 = vcombine.high %v285_v30, %v285_v30  ;;  %v303_v47 = vcombine.high %v295_v31, %v295_v31  ;;  %v304_v48 = vcombine.high %v302_v32, %v302_v32 }
  0x19   : > { %v366_v49 = vcombine.high %v358_v33, %v358_v33  ;;  %v367_v50 = vcombine.high %v365_v34, %v365_v34  ;;  %v383_v51 = vcombine.high %v375_v35, %v375_v35  ;;  %v400_v52 = vcombine.high %v392_v36, %v392_v36 }
  0x1a   : > { %v384_v54 = vcombine.high %v382_v37, %v382_v37  ;;  %v401_v55 = vcombine.high %v399_v38, %v399_v38  ;;  %v417_v56 = vcombine.high %v409_v39, %v409_v39  ;;  %v418_v57 = vcombine.high %v416_v40, %v416_v40 }
  0x86   : > { %v231_v53 = vpop.permute.xlu0 %230 }
  0x87   : > { %v321_v58 = vmul.f32 %v244_v25, %v231_v53  ;;  %v322_v59 = vmul.f32 %v252_v41, %v231_v53  ;;  %v323_v60 = vmul.f32 %v251_v26, %v231_v53  ;;  %v324_v61 = vmul.f32 %v253_v42, %v231_v53 }
  0x88   : > { %v325_v62 = vmul.f32 %v261_v27, %v231_v53  ;;  %v326_v63 = vmul.f32 %v269_v43, %v231_v53  ;;  %v327_v0 = vmul.f32 %v268_v29, %v231_v53  ;;  %v328_v1 = vmul.f32 %v270_v45, %v231_v53 }
  0x89   : > { %v329_v2 = vmul.f32 %v278_v28, %v231_v53  ;;  %v330_v3 = vmul.f32 %v286_v44, %v231_v53  ;;  %v331_v4 = vmul.f32 %v285_v30, %v231_v53  ;;  %v332_v5 = vmul.f32 %v287_v46, %v231_v53 }
  0x8a   : > { %v345_v6 = vpop.permute.xlu0 %344  ;;  %v333_v7 = vmul.f32 %v295_v31, %v231_v53  ;;  %v334_v8 = vmul.f32 %v303_v47, %v231_v53  ;;  %v335_v9 = vmul.f32 %v302_v32, %v231_v53  ;;  %v336_v10 = vmul.f32 %v304_v48, %v231_v53 }
  0x8b   : > { %v435_v11 = vmul.f32 %v358_v33, %v345_v6  ;;  %v436_v12 = vmul.f32 %v366_v49, %v345_v6  ;;  %v437_v14 = vmul.f32 %v365_v34, %v345_v6  ;;  %v438_v15 = vmul.f32 %v367_v50, %v345_v6 }
  0x8c   : > { %v439_v16 = vmul.f32 %v375_v35, %v345_v6  ;;  %v440_v17 = vmul.f32 %v383_v51, %v345_v6  ;;  %v441_v18 = vmul.f32 %v382_v37, %v345_v6  ;;  %v442_v19 = vmul.f32 %v384_v54, %v345_v6 }
  0x8d   : > { %v443_v20 = vmul.f32 %v392_v36, %v345_v6  ;;  %v444_v21 = vmul.f32 %v400_v52, %v345_v6  ;;  %v445_v22 = vmul.f32 %v399_v38, %v345_v6  ;;  %v446_v23 = vmul.f32 %v401_v55, %v345_v6 }
  0x8e   : > { %v447_v24 = vmul.f32 %v409_v39, %v345_v6  ;;  %v448_v25 = vmul.f32 %v417_v56, %v345_v6  ;;  %v449_v26 = vmul.f32 %v416_v40, %v345_v6  ;;  %v450_v27 = vmul.f32 %v418_v57, %v345_v6 }
  0x8f   : > { %v451_v28 = vadd.f32 %v435_v11, %v321_v58  ;;  %v452_v29 = vadd.f32 %v436_v12, %v322_v59  ;;  %v453_v30 = vadd.f32 %v437_v14, %v323_v60  ;;  %v454_v31 = vadd.f32 %v438_v15, %v324_v61 }
  0x90   : > { %v455_v32 = vadd.f32 %v439_v16, %v325_v62  ;;  %v456_v33 = vadd.f32 %v440_v17, %v326_v63  ;;  %v457_v34 = vadd.f32 %v441_v18, %v327_v0  ;;  %v458_v41 = vadd.f32 %v442_v19, %v328_v1 }
  0x91   : > { %v459_v35 = vadd.f32 %v443_v20, %v329_v2  ;;  %v460_v42 = vadd.f32 %v444_v21, %v330_v3  ;;  %v461_v37 = vadd.f32 %v445_v22, %v331_v4  ;;  %v462_v43 = vadd.f32 %v446_v23, %v332_v5 }
  0x92   : > { %v463_v36 = vadd.f32 %v447_v24, %v333_v7  ;;  %v464_v38 = vadd.f32 %v448_v25, %v334_v8  ;;  %v465_v44 = vadd.f32 %v449_v26, %v335_v9  ;;  %v466_v39 = vadd.f32 %v450_v27, %v336_v10 }
  0x93   : > { %v483_v45 = vcombine.low %v451_v28, %v452_v29  ;;  %v484_v40 = vcombine.low %v453_v30, %v454_v31  ;;  %v500_v46 = vcombine.low %v455_v32, %v456_v33  ;;  %v501_v47 = vcombine.low %v457_v34, %v458_v41 }
  0x94   : > { %v517_v48 = vcombine.low %v459_v35, %v460_v42  ;;  %v518_v49 = vcombine.low %v461_v37, %v462_v43  ;;  %v534_v50 = vcombine.low %v463_v36, %v464_v38  ;;  %v535_v51 = vcombine.low %v465_v44, %v466_v39 }
  0x95   : > { %v491_v52 = vrot.slane %v483_v45, %v718_v13  ;;  %v498_v53 = vrot.slane %v484_v40, %v718_v13  ;;  %v508_v54 = vrot.slane %v500_v46, %v718_v13  ;;  %v515_v55 = vrot.slane %v501_v47, %v718_v13 }
  0x96   : > { %v525_v56 = vrot.slane %v517_v48, %v718_v13  ;;  %v532_v57 = vrot.slane %v518_v49, %v718_v13  ;;  %v542_v58 = vrot.slane %v534_v50, %v718_v13  ;;  %v549_v59 = vrot.slane %v535_v51, %v718_v13 }
  0x97   : > { %v499_v60 = vcombine.low %v491_v52, %v498_v53  ;;  %v516_v61 = vcombine.low %v508_v54, %v515_v55 }
  0x98   : > { %v533_v62 = vcombine.low %v525_v56, %v532_v57  ;;  %v550_v63 = vcombine.low %v542_v58, %v549_v59 }
  0x99   : > { %555 = vst [vmem:[%s221_s5] sm:$0xff] %v499_v60  ;;  %556 = vst [vmem:[%s221_s5 + $0x8] sm:$0xff] %v516_v61 }
  0x9a   : > { %557 = vst [vmem:[%s221_s5 + $0x10] sm:$0xff] %v533_v62  ;;  %558 = vst [vmem:[%s221_s5 + $0x18] sm:$0xff] %v550_v63 }
  0x9b PF: > { %s14_s15 = sadd.s32 1, %s665_s15  }
  0x9c   : > { %p11_p4 = scmp.ge.s32.totalorder %s14_s15, 6  }
  0x9e   :  { %13 = sbr.rel (!%p11_p4) target bundleno = 1 (0x1), region = 69 }

</bundles_post_ra>
